<compile_context>
chip_gen: v6e
topology: v6e:2x2x1
jax: 0.10.0
libtpu: 0.0.40
codegen_flags: <defaults>
</compile_context>

<pallas_src>
import functools

import jax
import jax.numpy as jnp
from jax.experimental import pallas as pl
from jax.experimental.pallas import tpu as pltpu

_LANE = 128


def _stats_pooling_kernel(h_ref, mean_ref, std_ref, sum_acc, sq_acc,
                          *, n_sub, inv_t):
    t = pl.program_id(2)

    @pl.when(t == 0)
    def _init():
        sum_acc[...] = jnp.zeros_like(sum_acc)
        sq_acc[...] = jnp.zeros_like(sq_acc)

    # Accumulate each 128-lane chunk straight into the VMEM accumulators.
    # The per-chunk read-modify-write bounds the live vreg set to one chunk
    # plus one accumulator slice (clean vld/vadd/vst instead of spills), and
    # the VALU work stays at ~3 ops/element (cast, add, fma).
    # TODO(synk): for bf16 inputs on v7x (VALU-bound regime) offload the two
    # reductions to the idle MXU via dot(chunk, ones) / dot(chunk*chunk, ones).
    for k in range(n_sub):
        chunk = h_ref[:, :, k * _LANE:(k + 1) * _LANE].astype(jnp.float32)
        sum_acc[...] += chunk
        sq_acc[...] += chunk * chunk

    @pl.when(t == pl.num_programs(2) - 1)
    def _finalize():
        # Single cross-lane (XLU) reduce per output element, finalize only.
        total = jnp.sum(sum_acc[...], axis=-1)        # (b_tile, c_tile)
        total_sq = jnp.sum(sq_acc[...], axis=-1)      # (b_tile, c_tile)
        mean = total * inv_t
        # Single-pass variance; clamp guards tiny negatives from rounding.
        var = jnp.maximum(total_sq * inv_t - mean * mean, 0.0)
        std = jnp.sqrt(var + 1e-5)
        mean_ref[...] = mean.astype(mean_ref.dtype)
        std_ref[...] = std.astype(std_ref.dtype)


def _pick_tile(dim, quantum, cap):
    """Largest multiple of `quantum` dividing `dim`, <= cap.  Falls back to
    the full dim when `dim` is not a multiple of `quantum` (full-extent
    blocks are always legal)."""
    if dim % quantum != 0:
        return dim
    best = quantum
    t = quantum
    while t <= min(dim, cap):
        if dim % t == 0:
            best = t
        t += quantum
    return best


def _pick_batch_tile(b, want_split):
    """Largest multiple-of-8 divisor of b that still gives >= 2 grid steps
    (keeps the (8,128) output-block constraint); full b when impossible or
    not needed."""
    if not want_split:
        return b
    best = b
    for d in range(8, b // 2 + 1, 8):
        if b % d == 0:
            best = d
    return best


def _chip_vmem():
    """(physical capacity, default per-step budget) -- generation aware."""
    try:
        cap = int(pltpu.get_tpu_info().vmem_capacity_bytes)
    except Exception:  # off-TPU tracing / older runtimes: assume v7x (64 MiB)
        cap = 64 * 1024 * 1024
    # ~50% of physical, capped so v5e/v6e stay comfortably within limits.
    return cap, min(cap // 2, 48 * 1024 * 1024)


def stats_pooling(h, *, vmem_budget_bytes=None, buffer_count=2):
    """h: (B, C, T) -> (B, 2*C) = concat([mean_over_T, std_over_T], axis=-1)."""
    B, C, T = h.shape
    itemsize = jnp.dtype(h.dtype).itemsize

    cap, default_budget = _chip_vmem()
    budget = default_budget if vmem_budget_bytes is None else vmem_budget_bytes

    # Zero-pad ragged T to a multiple of 128: zeros contribute nothing to the
    # sums, and we divide by the true T, so the result is exact while the
    # pipelined 128-lane reduction path is always used.
    t_pad = ((T + _LANE - 1) // _LANE) * _LANE
    if t_pad != T:
        h = jnp.pad(h, ((0, 0), (0, 0), (0, t_pad - T)))

    # Tile policy: modest channel tile; give the budget to the contiguous
    # T axis.  Split B into a parallel grid axis when C alone would give a
    # single-iteration parallel axis (keeps both v7x TensorCores busy).
    c_tile = _pick_tile(C, _LANE, 256)
    b_tile = _pick_batch_tile(B, want_split=(C // c_tile) < 2)

    # Honest VMEM accounting: f32 scratch accumulators and (double-buffered)
    # output blocks come out of the budget before sizing the input block.
    scratch_bytes = 2 * b_tile * c_tile * _LANE * 4
    out_bytes = 2 * 2 * b_tile * c_tile * itemsize
    per_t_bytes = buffer_count * b_tile * c_tile * itemsize
    avail = max(0, budget - scratch_bytes - out_bytes)
    max_t = min(max(_LANE, avail // per_t_bytes), 8192)  # cap unroll/trace size
    t_tile = _pick_tile(t_pad, _LANE, max_t)

    grid = (B // b_tile, C // c_tile, t_pad // t_tile)
    n_sub = t_tile // _LANE if t_tile % _LANE == 0 else 1
    if t_tile % _LANE != 0:  # only possible if T itself was a full-extent tile
        n_sub = 1

    vmem_total = scratch_bytes + out_bytes + per_t_bytes * t_tile
    vmem_limit = max(16 * 1024 * 1024,
                     min(int(cap * 0.9), vmem_total + 8 * 1024 * 1024))

    in_spec_kwargs = {}
    if buffer_count != 2:
        # Optional deeper pipelining for short per-block compute / fast HBM.
        in_spec_kwargs["pipeline_mode"] = pl.Buffered(buffer_count)
    in_spec = pl.BlockSpec((b_tile, c_tile, t_tile),
                           lambda b, c, t: (b, c, t), **in_spec_kwargs)

    kernel = functools.partial(_stats_pooling_kernel,
                               n_sub=n_sub, inv_t=1.0 / T)

    mean, std = pl.pallas_call(
        kernel,
        out_shape=(jax.ShapeDtypeStruct((B, C), h.dtype),
                   jax.ShapeDtypeStruct((B, C), h.dtype)),
        grid_spec=pltpu.PrefetchScalarGridSpec(
            num_scalar_prefetch=0,
            grid=grid,
            in_specs=[in_spec],
            out_specs=[pl.BlockSpec((b_tile, c_tile), lambda b, c, t: (b, c)),
                       pl.BlockSpec((b_tile, c_tile), lambda b, c, t: (b, c))],
            scratch_shapes=[pltpu.VMEM((b_tile, c_tile, _LANE), jnp.float32),
                            pltpu.VMEM((b_tile, c_tile, _LANE), jnp.float32)]),
        compiler_params=pltpu.CompilerParams(
            dimension_semantics=("parallel", "parallel", "arbitrary"),
            vmem_limit_bytes=vmem_limit),
    )(h)

    # Lane-dense per-output stores inside the kernel; cheap concat out here.
    return jnp.concatenate([mean, std], axis=-1)


def stats_pooling_ref(h):
    h = h.astype(jnp.float32)
    mean = jnp.mean(h, axis=-1)
    std = jnp.sqrt(jnp.mean((h - mean[..., None]) ** 2, axis=-1) + 1e-5)
    return jnp.concatenate([mean, std], axis=-1)


if __name__ == "__main__":
    key = jax.random.PRNGKey(0)
    k1, k2, k3 = jax.random.split(key, 3)

    # 1) Tiny shape matching the module's forward (B, C, T); exercises the
    #    ragged-T zero-padding path (T=16 -> padded to 128).
    B, C, T = 2, 4, 16
    h = jax.random.normal(k1, (B, C, T), dtype=jnp.float32)
    out = jax.block_until_ready(stats_pooling(h))
    ref = stats_pooling_ref(h)
    assert out.shape == (B, 2 * C), out.shape
    assert jnp.allclose(out, ref, atol=1e-5, rtol=1e-5)

    # 2) Ragged T + multi-T-tile accumulator path: a small explicit budget
    #    forces t_tile=128, so the reduction runs over two grid steps.
    h2 = jax.random.normal(k2, (2, 256, 200), dtype=jnp.float32)
    out2 = jax.block_until_ready(
        stats_pooling(h2, vmem_budget_bytes=1 * 1024 * 1024))
    ref2 = stats_pooling_ref(h2)
    assert out2.shape == (2, 512), out2.shape
    assert jnp.allclose(out2, ref2, atol=1e-4, rtol=1e-4)

    # 3) bf16 input (dtype / cast path; f32 accumulation inside the kernel).
    h3 = jax.random.normal(k3, (2, 128, 384), dtype=jnp.bfloat16)
    out3 = jax.block_until_ready(stats_pooling(h3))
    ref3 = stats_pooling_ref(h3)
    assert out3.shape == (2, 256), out3.shape
    assert jnp.allclose(out3.astype(jnp.float32), ref3, atol=3e-2, rtol=3e-2)

    print("KERNEL_OK")
</pallas_src>

<mosaic_0001>
module attributes {stable_mosaic.version = 11 : i64} {
  func.func @_stats_pooling_kernel(%arg0: i32, %arg1: i32, %arg2: i32, %arg3: memref<2x4x128xf32, #tpu.memory_space<vmem>>, %arg4: memref<2x4xf32, #tpu.memory_space<vmem>>, %arg5: memref<2x4xf32, #tpu.memory_space<vmem>>, %arg6: memref<2x4x128xf32, #tpu.memory_space<vmem>>, %arg7: memref<2x4x128xf32, #tpu.memory_space<vmem>>) attributes {dimension_semantics = [#tpu.dimension_semantics<parallel>, #tpu.dimension_semantics<parallel>, #tpu.dimension_semantics<arbitrary>], iteration_bounds = array<i64: 1, 1, 1>, scalar_prefetch = 0 : i64, scratch_operands = 2 : i64, tpu.core_type = #tpu.core_type<tc>, window_params = [{transform_indices = @transform_0, window_bounds = array<i64: 2, 4, 128>}, {transform_indices = @transform_1, window_bounds = array<i64: 2, 4>}, {transform_indices = @transform_2, window_bounds = array<i64: 2, 4>}]} {
    %c0_i32 = arith.constant 0 : i32
    %0 = arith.cmpi eq, %arg2, %c0_i32 : i32
    %1 = arith.extui %0 : i1 to i32
    %c0_i32_0 = arith.constant 0 : i32
    %2 = arith.cmpi ne, %1, %c0_i32_0 : i32
    scf.if %2 {
      %cst = arith.constant 0.000000e+00 : f32
      %14 = vector.broadcast %cst : f32 to vector<2x4x128xf32>
      %c0_17 = arith.constant 0 : index
      %c0_18 = arith.constant 0 : index
      %c0_19 = arith.constant 0 : index
      %15 = vector.load %arg6[%c0_17, %c0_18, %c0_19] : memref<2x4x128xf32, #tpu.memory_space<vmem>>, vector<2x4x128xf32>
      tpu.vector_store %arg6[%c0_17, %c0_18, %c0_19], %14 {strides = array<i32>} : memref<2x4x128xf32, #tpu.memory_space<vmem>>, vector<2x4x128xf32>,
      %cst_20 = arith.constant 0.000000e+00 : f32
      %16 = vector.broadcast %cst_20 : f32 to vector<2x4x128xf32>
      %c0_21 = arith.constant 0 : index
      %c0_22 = arith.constant 0 : index
      %c0_23 = arith.constant 0 : index
      %17 = vector.load %arg7[%c0_21, %c0_22, %c0_23] : memref<2x4x128xf32, #tpu.memory_space<vmem>>, vector<2x4x128xf32>
      tpu.vector_store %arg7[%c0_21, %c0_22, %c0_23], %16 {strides = array<i32>} : memref<2x4x128xf32, #tpu.memory_space<vmem>>, vector<2x4x128xf32>,
    } else {
    }
    %c0 = arith.constant 0 : index
    %c0_1 = arith.constant 0 : index
    %c0_2 = arith.constant 0 : index
    %3 = vector.load %arg3[%c0, %c0_1, %c0_2] : memref<2x4x128xf32, #tpu.memory_space<vmem>>, vector<2x4x128xf32>
    %c0_3 = arith.constant 0 : index
    %c0_4 = arith.constant 0 : index
    %c0_5 = arith.constant 0 : index
    %4 = vector.load %arg6[%c0_3, %c0_4, %c0_5] : memref<2x4x128xf32, #tpu.memory_space<vmem>>, vector<2x4x128xf32>
    %5 = arith.addf %4, %3 : vector<2x4x128xf32>
    %c0_6 = arith.constant 0 : index
    %c0_7 = arith.constant 0 : index
    %c0_8 = arith.constant 0 : index
    %6 = vector.load %arg6[%c0_6, %c0_7, %c0_8] : memref<2x4x128xf32, #tpu.memory_space<vmem>>, vector<2x4x128xf32>
    tpu.vector_store %arg6[%c0_6, %c0_7, %c0_8], %5 {strides = array<i32>} : memref<2x4x128xf32, #tpu.memory_space<vmem>>, vector<2x4x128xf32>,
    %c0_9 = arith.constant 0 : index
    %c0_10 = arith.constant 0 : index
    %c0_11 = arith.constant 0 : index
    %7 = vector.load %arg7[%c0_9, %c0_10, %c0_11] : memref<2x4x128xf32, #tpu.memory_space<vmem>>, vector<2x4x128xf32>
    %8 = arith.mulf %3, %3 : vector<2x4x128xf32>
    %9 = arith.addf %7, %8 : vector<2x4x128xf32>
    %c0_12 = arith.constant 0 : index
    %c0_13 = arith.constant 0 : index
    %c0_14 = arith.constant 0 : index
    %10 = vector.load %arg7[%c0_12, %c0_13, %c0_14] : memref<2x4x128xf32, #tpu.memory_space<vmem>>, vector<2x4x128xf32>
    tpu.vector_store %arg7[%c0_12, %c0_13, %c0_14], %9 {strides = array<i32>} : memref<2x4x128xf32, #tpu.memory_space<vmem>>, vector<2x4x128xf32>,
    %c0_i32_15 = arith.constant 0 : i32
    %11 = arith.cmpi eq, %arg2, %c0_i32_15 : i32
    %12 = arith.extui %11 : i1 to i32
    %c0_i32_16 = arith.constant 0 : i32
    %13 = arith.cmpi ne, %12, %c0_i32_16 : i32
    scf.if %13 {
      %c0_17 = arith.constant 0 : index
      %c0_18 = arith.constant 0 : index
      %c0_19 = arith.constant 0 : index
      %14 = vector.load %arg6[%c0_17, %c0_18, %c0_19] : memref<2x4x128xf32, #tpu.memory_space<vmem>>, vector<2x4x128xf32>
      %cst = arith.constant dense<0.000000e+00> : vector<2x4xf32>
      %15 = vector.multi_reduction <add>, %14, %cst [2] : vector<2x4x128xf32> to vector<2x4xf32>
      %c0_20 = arith.constant 0 : index
      %c0_21 = arith.constant 0 : index
      %c0_22 = arith.constant 0 : index
      %16 = vector.load %arg7[%c0_20, %c0_21, %c0_22] : memref<2x4x128xf32, #tpu.memory_space<vmem>>, vector<2x4x128xf32>
      %cst_23 = arith.constant dense<0.000000e+00> : vector<2x4xf32>
      %17 = vector.multi_reduction <add>, %16, %cst_23 [2] : vector<2x4x128xf32> to vector<2x4xf32>
      %cst_24 = arith.constant 6.250000e-02 : f32
      %18 = vector.broadcast %cst_24 : f32 to vector<2x4xf32>
      %19 = arith.mulf %15, %18 : vector<2x4xf32>
      %cst_25 = arith.constant 6.250000e-02 : f32
      %20 = vector.broadcast %cst_25 : f32 to vector<2x4xf32>
      %21 = arith.mulf %17, %20 : vector<2x4xf32>
      %22 = arith.mulf %19, %19 : vector<2x4xf32>
      %23 = arith.subf %21, %22 : vector<2x4xf32>
      %cst_26 = arith.constant 0.000000e+00 : f32
      %24 = vector.broadcast %cst_26 : f32 to vector<2x4xf32>
      %25 = arith.maximumf %23, %24 : vector<2x4xf32>
      %cst_27 = arith.constant 9.99999974E-6 : f32
      %26 = vector.broadcast %cst_27 : f32 to vector<2x4xf32>
      %27 = arith.addf %25, %26 : vector<2x4xf32>
      %28 = math.sqrt %27 : vector<2x4xf32>
      %c0_28 = arith.constant 0 : index
      %c0_29 = arith.constant 0 : index
      %29 = vector.load %arg4[%c0_28, %c0_29] : memref<2x4xf32, #tpu.memory_space<vmem>>, vector<2x4xf32>
      tpu.vector_store %arg4[%c0_28, %c0_29], %19 {strides = array<i32>} : memref<2x4xf32, #tpu.memory_space<vmem>>, vector<2x4xf32>,
      %c0_30 = arith.constant 0 : index
      %c0_31 = arith.constant 0 : index
      %30 = vector.load %arg5[%c0_30, %c0_31] : memref<2x4xf32, #tpu.memory_space<vmem>>, vector<2x4xf32>
      tpu.vector_store %arg5[%c0_30, %c0_31], %28 {strides = array<i32>} : memref<2x4xf32, #tpu.memory_space<vmem>>, vector<2x4xf32>,
    } else {
    }
    return
  }
  func.func @transform_0(%arg0: i32, %arg1: i32, %arg2: i32) -> (i32, i32, i32) {
    %c0_i32 = arith.constant 0 : i32
    return %arg0, %arg1, %arg2 : i32, i32, i32
  }
  func.func @transform_1(%arg0: i32, %arg1: i32, %arg2: i32) -> (i32, i32) {
    %c0_i32 = arith.constant 0 : i32
    return %arg0, %arg1 : i32, i32
  }
  func.func @transform_2(%arg0: i32, %arg1: i32, %arg2: i32) -> (i32, i32) {
    %c0_i32 = arith.constant 0 : i32
    return %arg0, %arg1 : i32, i32
  }
}

</mosaic_0001>

<bundles_post_ra>
// kernel: tpu_custom_call.1
= control target key start
LH: loop header
LB: loop body
LE: loop exit
PB: predicated region body
PF: predicated region fallthrough
CT: control target
= control target key end

     0   :  { %8 = vsyncpa [#allocation5], 0  ;;  %s265_s0 = inlined_call_operand.hbm [shape: f32[2,4,128], index: 0, kind: input, shape index: {}]   ;;  %s266_s1 = inlined_call_operand.hbm [shape: f32[2,4], index: 1, kind: output, shape index: {0}]   ;;  %s267_s2 = inlined_call_operand.hbm [shape: f32[2,4], index: 2, kind: output, shape index: {1}]  }
   0x1   :  { %9 = vsyncpa [#allocation6], 0 }
   0x2   :  { %10 = vsyncpa [#allocation9], 0  ;;  %s231_s9 = smov [#allocation4]  }
   0x3   :  { %s16_s10 = sshll.u32 %s231_s9, 4  ;;  %s17_s10 = int_to_ptr.vmem [resolvable:$true] %s16_s10 }
   0x4   :  { %s173_s11 = scalar_lea.vmem %s17_s10, 128  ;;  %p178_p1 = scmp.lt.s32.totalorder %s17_s10, %s17_s10 }
   0x5   :  { %p174_p0 = scmp.ne.s32.totalorder %s17_s10, %s173_s11  ;;  %p179_p2 = scmp.lt.s32.totalorder %s173_s11, %s173_s11 }
   0x7   :  { %p180_p3 = por %p179_p2, %p178_p1 }
   0x9   :  { %p181_p4 = pnand %p180_p3, %p174_p0 }
   0xb   :  { %184 = shalt.err (!%p181_p4)
}
   0xc   :  { %s232_s12 = smov 64   ;;  %s233_s13 = smov 4  }
   0xd   :  { %22 = dma.hbm_to_vmem [thread:$0]  %s265_s0, 128, %s17_s10, [#allocation5], %s232_s12, %s232_s12, %s233_s13  }
   0xe   :  { %225 = dma.done.wait [#allocation5], 128  }
   0xf   :  { %226 = vsyncadd [#allocation5], 4294967168  ;;  %v234_v0 = vmov 0.0   ;;  %v34_v1 = vld [vmem:[#allocation4] sm:$0xf]  ;;  %vm55_vm0 = vcmask 1043456   ;;  %v98_v21 = vlaneseq }
  0x10   :  { %30 = vst [vmem:[#allocation2] sm:$0xf] %v234_v0  ;;  %31 = vst [vmem:[#allocation2 + $0x4] sm:$0xf] %v234_v0  ;;  %v35_v2 = vld [vmem:[#allocation4 + $0x4] sm:$0xf]  ;;  %v44_v5 = vmul.f32 %v34_v1, %v34_v1 }
  0x11   :  { %32 = vst [vmem:[#allocation3] sm:$0xf] %v234_v0  ;;  %33 = vst [vmem:[#allocation3 + $0x4] sm:$0xf] %v234_v0  ;;  %v45_v7 = vmul.f32 %v35_v2, %v35_v2  ;;  %v99_v22 = vand.u32 127, %v98_v21  ;;  %v101_v23 = vshrl.u32 %v98_v21, 7 }
  0x12   :  { %s235_s0 = smov [#allocation7]   ;;  %vm108_vm1 = vcmask 1041409   ;;  %vm111_vm2 = vcmask 25600  }
  0x13   :  { %v102_v28 = vsub.s32 %v99_v22, %v101_v23  ;;  %s132_s16 = sshll.u32 %s235_s0, 4  ;;  %s133_s16 = int_to_ptr.vmem [resolvable:$true] %s132_s16 }
  0x14   :  { %s185_s17 = scalar_lea.vmem %s133_s16, 32  ;;  %p190_p6 = scmp.lt.s32.totalorder %s133_s16, %s133_s16 }
  0x15   :  { %p186_p5 = scmp.ne.s32.totalorder %s133_s16, %s185_s17  ;;  %p191_p7 = scmp.lt.s32.totalorder %s185_s17, %s185_s17 }
  0x17   :  { %v36_v3 = vld [vmem:[#allocation2] sm:$0xf]  ;;  %v37_v6 = vld [vmem:[#allocation2 + $0x4] sm:$0xf]  ;;  %p192_p8 = por %p191_p7, %p190_p6 }
  0x18   :  { %v42_v4 = vld [vmem:[#allocation3] sm:$0xf]  ;;  %v38_v8 = vadd.f32 %v36_v3, %v34_v1  ;;  %v39_v9 = vadd.f32 %v37_v6, %v35_v2  ;;  %v43_v10 = vld [vmem:[#allocation3 + $0x4] sm:$0xf] }
  0x19   :  { %v46_v11 = vadd.f32 %v44_v5, %v42_v4  ;;  %v47_v12 = vadd.f32 %v45_v7, %v43_v10  ;;  %p193_p9 = pnand %p192_p8, %p186_p5 }
  0x1a   :  { %40 = vst [vmem:[#allocation2] sm:$0xf] %v38_v8  ;;  %41 = vst [vmem:[#allocation2 + $0x4] sm:$0xf] %v39_v9 }
  0x1b   :  { %48 = vst [vmem:[#allocation3] sm:$0xf] %v46_v11  ;;  %49 = vst [vmem:[#allocation3 + $0x4] sm:$0xf] %v47_v12 }
  0x21   :  { %v53_v13 = vld [vmem:[#allocation2] sm:$0xf]  ;;  %v54_v14 = vld [vmem:[#allocation2 + $0x4] sm:$0xf] }
  0x22   :  { %v56_v15 = vsel %vm55_vm0, %v53_v13, 0.0  ;;  %v62_v16 = vld [vmem:[#allocation3] sm:$0xf]  ;;  %v63_v17 = vld [vmem:[#allocation3 + $0x4] sm:$0xf]  ;;  %v59_v19 = vsel %vm55_vm0, %v54_v14, 0.0 }
  0x23   :  { %57 = vadd.xlane.f32.xlu0 %v56_v15  ;;  %v64_v18 = vsel %vm55_vm0, %v62_v16, 0.0  ;;  %v67_v20 = vsel %vm55_vm0, %v63_v17, 0.0 }
  0x24   :  { %65 = vadd.xlane.f32.xlu1 %v64_v18 }
  0x27   :  { %60 = vadd.xlane.f32.xlu0 %v59_v19 }
  0x28   :  { %68 = vadd.xlane.f32.xlu1 %v67_v20 }
  0xac   :  { %v58_v24 = vpop.xlane.xlu0 %57 }
  0xad   :  { %v70_v25 = vmul.f32 0.0625, %v58_v24  ;;  %v66_v26 = vpop.xlane.xlu1 %65 }
  0xae   :  { %v72_v27 = vmul.f32 0.0625, %v66_v26 }
  0xaf   :  { %v74_v29 = vmul.f32 %v70_v25, %v70_v25  ;;  %v103_v35 = vrot.slane %v70_v25, %v102_v28 }
  0xb0   :  { %v61_v30 = vpop.xlane.xlu0 %60 }
  0xb1   :  { %v76_v31 = vsub.f32 %v72_v27, %v74_v29  ;;  %v71_v32 = vmul.f32 0.0625, %v61_v30  ;;  %v69_v33 = vpop.xlane.xlu1 %68 }
  0xb2   :  { %v73_v34 = vmul.f32 0.0625, %v69_v33 }
  0xb3   :  { %v78_v36 = vmax.f32 %v76_v31, 0.0  ;;  %v75_v37 = vmul.f32 %v71_v32, %v71_v32  ;;  %v107_v38 = vrot.slane %v71_v32, %v102_v28 }
  0xb5   :  { %v80_v39 = vadd.f32 1e-05, %v78_v36  ;;  %v77_v40 = vsub.f32 %v73_v34, %v75_v37  ;;  %v109_v41 = vsel %vm108_vm1, %v107_v38, %v103_v35 }
  0xb6   :  { %112 = vst.msk [vmem:[#allocation7] sm:$0x3] %vm111_vm2, %v109_v41 }
  0xb7   :  { %161 = vrsqrt.f32 %v80_v39  ;;  %v79_v42 = vmax.f32 %v77_v40, 0.0 }
  0xb8   :  { %196 = shalt.err (!%p193_p9)
}
  0xb9   :  { %135 = dma.vmem_to_hbm [thread:$0]  %s133_s16, 32, %s266_s1, [#allocation6]   ;;  %v81_v43 = vadd.f32 1e-05, %v79_v42  ;;  %vm84_vm3 = vcmp.eq.f32.partialorder %v80_v39, inf  ;;  %v87_v48 = vand.u32 2147483648, %v80_v39 }
  0xba   :  { %vm86_vm4 = vcmp.eq.f32.partialorder %v80_v39, 0.0  ;;  %s236_s20 = smov [#allocation8]  }
  0xbb   :  { %163 = vrsqrt.f32 %v81_v43  ;;  %vm91_vm5 = vcmp.eq.f32.partialorder %v81_v43, inf  ;;  %v94_v51 = vand.u32 2147483648, %v81_v43  ;;  %vm93_vm6 = vcmp.eq.f32.partialorder %v81_v43, 0.0  ;;  %s142_s21 = sshll.u32 %s236_s20, 4  ;;  %s143_s21 = int_to_ptr.vmem [resolvable:$true] %s142_s21 }
  0xbc   :  { %s205_s1 = scalar_lea.vmem %s143_s21, 32  ;;  %p210_p11 = scmp.lt.s32.totalorder %s143_s21, %s143_s21 }
  0xbd   :  { %p206_p10 = scmp.ne.s32.totalorder %s143_s21, %s205_s1  ;;  %p211_p12 = scmp.lt.s32.totalorder %s205_s1, %s205_s1 }
  0xbf   :  { %p212_p13 = por %p211_p12, %p210_p11 }
  0xc1   :  { %p213_p0 = pnand %p212_p13, %p206_p10 }
  0xc4   :  { %v162_v44 = vpop.eup %161 }
  0xc5   :  { %v83_v45 = vmul.f32 %v162_v44, %v80_v39 }
  0xc7   :  { %v85_v46 = vsel %vm84_vm3, %v80_v39, %v83_v45 }
  0xc8   :  { %v164_v47 = vpop.eup %163  ;;  %v88_v50 = vsel %vm86_vm4, %v87_v48, %v85_v46 }
  0xc9   :  { %v90_v49 = vmul.f32 %v164_v47, %v81_v43  ;;  %v118_v54 = vrot.slane %v88_v50, %v102_v28 }
  0xcb   :  { %v92_v52 = vsel %vm91_vm5, %v81_v43, %v90_v49 }
  0xcc   :  { %v95_v53 = vsel %vm93_vm6, %v94_v51, %v92_v52 }
  0xcd   :  { %v122_v55 = vrot.slane %v95_v53, %v102_v28 }
  0xcf   :  { %v123_v56 = vsel %vm108_vm1, %v122_v55, %v118_v54 }
  0xd0   :  { %125 = vst.msk [vmem:[#allocation8] sm:$0x3] %vm111_vm2, %v123_v56 }
  0xd1   :  { %216 = shalt.err (!%p213_p0)
}
  0xd2   :  { %145 = dma.vmem_to_hbm [thread:$0]  %s143_s21, 32, %s267_s2, [#allocation9]  }
  0xd3   :  { %227 = dma.done.wait [#allocation6], 32  }
  0xd4   :  { %228 = vsyncadd [#allocation6], 4294967264 }
  0xd5   :  { %229 = dma.done.wait [#allocation9], 32  }
  0xd6   :  { %230 = vsyncadd [#allocation9], 4294967264 }
  0xd7   :  { %152 = vsyncpa [#allocation5], 1 }
  0xd8   :  { %153 = vsyncpa [#allocation6], 1 }
  0xd9   :  { %154 = vsyncpa [#allocation9], 1 }

</bundles_post_ra>
